<compile_context>
chip_gen: v7x
topology: tpu7x:2x2x1
jax: 0.10.0
libtpu: 0.0.40
codegen_flags: <defaults>
</compile_context>

<pallas_src>
import functools
import numpy as np

import jax
import jax.numpy as jnp
from jax import lax
from jax.experimental import pallas as pl
from jax.experimental.pallas import tpu as pltpu


# ----------------------------------------------------------------------------
# Kernel 1: phase-decomposed transposed conv as a single matmul per tile,
#           fused (masked) per-channel sum / sum-of-squares for BatchNorm.
# ----------------------------------------------------------------------------
def _convt_stats_kernel(p_ref, w_ref, m_ref, z_ref, st_ref):
    # p_ref: (Mt, T*T*Cin)   w_ref: (T*T*Cin, s*s*Cout)   m_ref/z_ref: (Mt, s*s*Cout)
    acc = jnp.dot(p_ref[...], w_ref[...], preferred_element_type=jnp.float32)
    z_ref[...] = acc.astype(z_ref.dtype)

    # batch statistics, masked to valid (non-cropped, non-padded) output positions
    zm = acc * m_ref[...]
    s0 = jnp.sum(zm, axis=0, keepdims=True)        # (1, s*s*Cout)  sum
    s1 = jnp.sum(zm * acc, axis=0, keepdims=True)  # (1, s*s*Cout)  sum of squares
    st_ref[...] = jnp.concatenate([s0, s1], axis=0)  # (2, s*s*Cout), one block per grid step


# ----------------------------------------------------------------------------
# Kernel 2: BatchNorm affine (precomputed per-channel scale/shift, tiled to the
#           lane-dense layout) + LeakyReLU(0.2), elementwise.
# ----------------------------------------------------------------------------
def _bn_act_kernel(y_ref, sc_ref, sh_ref, o_ref, *, slope):
    y = y_ref[...].astype(jnp.float32)             # (Rt, lanes)
    out = y * sc_ref[...] + sh_ref[...]            # broadcast (1, lanes)
    o_ref[...] = jnp.where(out >= 0.0, out, slope * out).astype(o_ref.dtype)


def _round_up(x, m):
    return (x + m - 1) // m * m


# ----------------------------------------------------------------------------
# Wrapper: layout glue + two pallas_calls.
# ----------------------------------------------------------------------------
@functools.partial(jax.jit, static_argnames=("stride", "padding", "eps",
                                             "negative_slope", "intermediate_dtype"))
def conv_transpose2d_block(x_nchw, weight, bias, gamma, beta, *,
                           stride, padding, eps=1e-5, negative_slope=0.2,
                           intermediate_dtype=jnp.float32):
    """ConvTranspose2d + BatchNorm2d (batch stats) + LeakyReLU(0.2); NCHW in/out.

    weight: (Cin, Cout, K, K) PyTorch ConvTranspose2d layout.
    The conv bias cancels exactly under train-mode BatchNorm, so it is not added
    (perf-review item 9); the result is identical to the PyTorch module.
    """
    del bias  # cancels in (y - mean) and in var under BatchNorm

    N, Cin, H, W = x_nchw.shape
    Cin_w, Cout, K, Kw = weight.shape
    assert Cin == Cin_w and K == Kw
    s, p = int(stride), int(padding)
    Ho = (H - 1) * s - 2 * p + K
    Wo = (W - 1) * s - 2 * p + K
    T = -(-K // s)                       # taps per phase = ceil(K / s)

    # base-pixel (q) ranges that cover every output row/col:  oh = s*q + rh - p
    q0h, q1h = p // s, (Ho - 1 + p) // s
    q0w, q1w = p // s, (Wo - 1 + p) // s
    Qh, Qw = q1h - q0h + 1, q1w - q0w + 1
    PLh, PHh = max(0, T - 1 - q0h), max(0, q1h - (H - 1))
    PLw, PHw = max(0, T - 1 - q0w), max(0, q1w - (W - 1))

    TCin = T * T * Cin                   # matmul contraction (32 in the demo; >=128 for Cin>=32)
    PhC = s * s * Cout                   # phases x out-channels

    # ---- glue: NCHW -> NHWC, border pad, im2col over the ORIGINAL (undilated) input ----
    x = jnp.transpose(x_nchw, (0, 2, 3, 1)).astype(jnp.float32)
    xp = jnp.pad(x, ((0, 0), (PLh, PHh), (PLw, PHw), (0, 0)))
    taps = []
    for th in range(T):
        r0 = q0h - (T - 1) + th + PLh
        for tw in range(T):
            c0 = q0w - (T - 1) + tw + PLw
            taps.append(xp[:, r0:r0 + Qh, c0:c0 + Qw, :])
    patches = jnp.stack(taps, axis=3).reshape(N, Qh * Qw, TCin)   # (N, Q, T*T*Cin)

    # ---- row tiling of the flattened output-pixel grid ----
    Q_total = Qh * Qw
    row_bytes = (TCin + 2 * PhC) * 4
    Mt = min(_round_up(Q_total, 8), max(8, _round_up((2 << 20) // row_bytes, 8)))
    M_pad = _round_up(Q_total, Mt)
    grid_m = M_pad // Mt
    patches = jnp.pad(patches, ((0, 0), (0, M_pad - Q_total), (0, 0)))

    # ---- phase weight matrix: rows (th, tw, ci) x cols (rh, rw, co) ----
    w_f32 = weight.astype(jnp.float32)
    wm = jnp.zeros((T, T, s, s, Cin, Cout), jnp.float32)
    for th in range(T):
        jh = T - 1 - th
        for tw in range(T):
            jw = T - 1 - tw
            for rh in range(s):
                kh = rh + s * jh
                if kh >= K:
                    continue
                for rw in range(s):
                    kw = rw + s * jw
                    if kw >= K:
                        continue
                    wm = wm.at[th, tw, rh, rw].set(w_f32[:, :, kh, kw])
    w_mat = wm.transpose(0, 1, 4, 2, 3, 5).reshape(TCin, PhC)

    # ---- static validity mask: which (q, phase) positions land inside the output ----
    oh = s * (q0h + np.arange(Qh))[:, None] + np.arange(s)[None, :] - p     # (Qh, s)
    ow = s * (q0w + np.arange(Qw))[:, None] + np.arange(s)[None, :] - p     # (Qw, s)
    vh = (oh >= 0) & (oh < Ho)
    vw = (ow >= 0) & (ow < Wo)
    m4 = vh[:, None, :, None] & vw[None, :, None, :]                        # (Qh, Qw, s, s)
    mask_np = np.zeros((M_pad, PhC), np.float32)
    mask_np[:Q_total] = np.repeat(m4.reshape(Q_total, s * s), Cout, axis=1)
    mask = jnp.asarray(mask_np)

    # ---- pallas_call 1: conv matmul + fused stats (both grid axes parallel) ----
    k1_blk_bytes = 4 * (Mt * TCin + TCin * PhC + 2 * Mt * PhC + 2 * PhC)
    z, stats = pl.pallas_call(
        _convt_stats_kernel,
        out_shape=(jax.ShapeDtypeStruct((N, M_pad, PhC), intermediate_dtype),
                   jax.ShapeDtypeStruct((N, grid_m, 2, PhC), jnp.float32)),
        grid=(N, grid_m),
        in_specs=[pl.BlockSpec((None, Mt, TCin), lambda n, m: (n, m, 0)),
                  pl.BlockSpec((TCin, PhC), lambda n, m: (0, 0)),
                  pl.BlockSpec((Mt, PhC), lambda n, m: (m, 0))],
        out_specs=(pl.BlockSpec((None, Mt, PhC), lambda n, m: (n, m, 0)),
                   pl.BlockSpec((None, None, 2, PhC), lambda n, m: (n, m, 0, 0))),
        compiler_params=pltpu.CompilerParams(
            dimension_semantics=("parallel", "parallel"),
            vmem_limit_bytes=int(min(64 << 20, max(8 << 20, 4 * k1_blk_bytes)))),
    )(patches, w_mat, mask)

    # ---- tiny cross-block stat reduction + BN scale/shift (wrapper; negligible work) ----
    st = jnp.sum(stats, axis=(0, 1)).reshape(2, s * s, Cout).sum(axis=1)    # (2, Cout)
    inv_cnt = 1.0 / float(N * Ho * Wo)
    mean = st[0] * inv_cnt
    var = st[1] * inv_cnt - mean * mean            # biased variance (PyTorch BN normalization)
    scale = gamma.astype(jnp.float32) * lax.rsqrt(var + eps)
    shift = beta.astype(jnp.float32) - mean * scale

    # ---- pallas_call 2: BN + LeakyReLU on a lane-dense view of z ----
    if M_pad * PhC * 4 <= (2 << 20):               # whole per-image slab is small
        rows, lanes, Rt = M_pad // 8, 8 * PhC, M_pad // 8
    else:                                          # large images: reuse the row tiling
        rows, lanes, Rt = M_pad, PhC, Mt
    zv = z.reshape(N, rows, lanes)                 # contiguous reshape (bitcast-level)
    scale_l = jnp.tile(scale, lanes // Cout).reshape(1, lanes)
    shift_l = jnp.tile(shift, lanes // Cout).reshape(1, lanes)

    k2_blk_bytes = 4 * (2 * Rt * lanes + 2 * lanes)
    bn_kernel = functools.partial(_bn_act_kernel, slope=float(negative_slope))
    act = pl.pallas_call(
        bn_kernel,
        out_shape=jax.ShapeDtypeStruct((N, rows, lanes), jnp.float32),
        grid=(N, rows // Rt),
        in_specs=[pl.BlockSpec((None, Rt, lanes), lambda n, r: (n, r, 0)),
                  pl.BlockSpec((1, lanes), lambda n, r: (0, 0)),
                  pl.BlockSpec((1, lanes), lambda n, r: (0, 0))],
        out_specs=pl.BlockSpec((None, Rt, lanes), lambda n, r: (n, r, 0)),
        compiler_params=pltpu.CompilerParams(
            dimension_semantics=("parallel", "parallel"),
            vmem_limit_bytes=int(min(64 << 20, max(8 << 20, 4 * k2_blk_bytes)))),
    )(zv, scale_l, shift_l)

    # ---- glue: depth-to-space, crop to the valid output window, back to NCHW ----
    y = act.reshape(N, M_pad, PhC)[:, :Q_total].reshape(N, Qh, Qw, s, s, Cout)
    y = jnp.transpose(y, (0, 1, 3, 2, 4, 5)).reshape(N, Qh * s, Qw * s, Cout)
    rh0, rw0 = p - s * q0h, p - s * q0w
    y = y[:, rh0:rh0 + Ho, rw0:rw0 + Wo, :]
    return jnp.transpose(y, (0, 3, 1, 2))


# ----------------------------------------------------------------------------
# Pure-JAX reference (independent formulation: dilated conv + flipped kernel).
# ----------------------------------------------------------------------------
def _reference(x, w, b, gamma, beta, *, stride, padding, eps=1e-5, slope=0.2):
    K = w.shape[2]
    w_oihw = jnp.transpose(w[:, :, ::-1, ::-1], (1, 0, 2, 3))   # (Cout, Cin, K, K)
    y = lax.conv_general_dilated(
        x, w_oihw, window_strides=(1, 1),
        padding=[(K - 1 - padding, K - 1 - padding)] * 2,
        lhs_dilation=(stride, stride),
        dimension_numbers=('NCHW', 'OIHW', 'NCHW'))
    y = y + b.reshape(1, -1, 1, 1)
    mean = jnp.mean(y, axis=(0, 2, 3), keepdims=True)
    var = jnp.mean((y - mean) ** 2, axis=(0, 2, 3), keepdims=True)   # biased
    y = (y - mean) / jnp.sqrt(var + eps)
    y = y * gamma.reshape(1, -1, 1, 1) + beta.reshape(1, -1, 1, 1)
    return jnp.where(y >= 0, y, slope * y)


if __name__ == "__main__":
    # ConvTranspose2dBlock(in_ch=8, out_ch=16, kernel_size=4, stride=2, padding=1,
    #                      use_norm=True, use_act=True)  -> BN + LeakyReLU(0.2)
    N, Cin, H, W = 2, 8, 8, 8
    Cout, K, stride, padding = 16, 4, 2, 1

    key = jax.random.PRNGKey(0)
    kx, kw, kb, kg, kbeta = jax.random.split(key, 5)
    x = jax.random.normal(kx, (N, Cin, H, W), dtype=jnp.float32)
    weight = 0.1 * jax.random.normal(kw, (Cin, Cout, K, K), dtype=jnp.float32)
    bias = 0.1 * jax.random.normal(kb, (Cout,), dtype=jnp.float32)
    gamma = 1.0 + 0.1 * jax.random.normal(kg, (Cout,), dtype=jnp.float32)
    beta = 0.1 * jax.random.normal(kbeta, (Cout,), dtype=jnp.float32)

    out = conv_transpose2d_block(x, weight, bias, gamma, beta,
                                 stride=stride, padding=padding)
    out = jax.block_until_ready(out)

    ref = _reference(x, weight, bias, gamma, beta, stride=stride, padding=padding)
    ref = jax.block_until_ready(ref)

    Ho = (H - 1) * stride - 2 * padding + K
    Wo = (W - 1) * stride - 2 * padding + K
    assert out.shape == ref.shape == (N, Cout, Ho, Wo)
    err = float(jnp.max(jnp.abs(out - ref)))
    assert err < 1e-4, f"max abs err {err}"
    print("KERNEL_OK")
</pallas_src>

<mosaic_0001>
module attributes {stable_mosaic.version = 11 : i64} {
  func.func @_convt_stats_kernel(%arg0: i32, %arg1: i32, %arg2: memref<1x88x32xf32, #tpu.memory_space<vmem>>, %arg3: memref<32x64xf32, #tpu.memory_space<vmem>>, %arg4: memref<88x64xf32, #tpu.memory_space<vmem>>, %arg5: memref<1x88x64xf32, #tpu.memory_space<vmem>>, %arg6: memref<1x1x2x64xf32, #tpu.memory_space<vmem>>) attributes {dimension_semantics = [#tpu.dimension_semantics<parallel>, #tpu.dimension_semantics<parallel>], iteration_bounds = array<i64: 2, 1>, scalar_prefetch = 0 : i64, scratch_operands = 0 : i64, tpu.core_type = #tpu.core_type<tc>, window_params = [{transform_indices = @transform_0, window_bounds = array<i64: 1, 88, 32>}, {pipeline_mode = #tpu.pipeline_mode<synchronous>, transform_indices = @transform_1, window_bounds = array<i64: 32, 64>}, {transform_indices = @transform_2, window_bounds = array<i64: 88, 64>}, {transform_indices = @transform_3, window_bounds = array<i64: 1, 88, 64>}, {transform_indices = @transform_4, window_bounds = array<i64: 1, 1, 2, 64>}]} {
    %c0 = arith.constant 0 : index
    %c0_0 = arith.constant 0 : index
    %c0_1 = arith.constant 0 : index
    %0 = vector.load %arg2[%c0, %c0_0, %c0_1] : memref<1x88x32xf32, #tpu.memory_space<vmem>>, vector<1x88x32xf32>
    %1 = vector.shape_cast %0 : vector<1x88x32xf32> to vector<88x32xf32>
    %c0_2 = arith.constant 0 : index
    %c0_3 = arith.constant 0 : index
    %2 = vector.load %arg3[%c0_2, %c0_3] : memref<32x64xf32, #tpu.memory_space<vmem>>, vector<32x64xf32>
    %cst = arith.constant dense<0.000000e+00> : vector<88x64xf32>
    %3 = tpu.matmul %1, %2, %cst {dimension_numbers = #tpu.dot_dimension_numbers<[1], [0], [0], [1], [0, 0, 1, 1], [], []>} : vector<88x32xf32>, vector<32x64xf32>, vector<88x64xf32> -> vector<88x64xf32>
    %c0_4 = arith.constant 0 : index
    %c0_5 = arith.constant 0 : index
    %c0_6 = arith.constant 0 : index
    %4 = vector.load %arg5[%c0_4, %c0_5, %c0_6] : memref<1x88x64xf32, #tpu.memory_space<vmem>>, vector<1x88x64xf32>
    %5 = vector.shape_cast %4 : vector<1x88x64xf32> to vector<88x64xf32>
    %6 = vector.shape_cast %3 : vector<88x64xf32> to vector<1x88x64xf32>
    tpu.vector_store %arg5[%c0_4, %c0_5, %c0_6], %6 {strides = array<i32>} : memref<1x88x64xf32, #tpu.memory_space<vmem>>, vector<1x88x64xf32>,
    %c0_7 = arith.constant 0 : index
    %c0_8 = arith.constant 0 : index
    %7 = vector.load %arg4[%c0_7, %c0_8] : memref<88x64xf32, #tpu.memory_space<vmem>>, vector<88x64xf32>
    %8 = arith.mulf %3, %7 : vector<88x64xf32>
    %cst_9 = arith.constant dense<0.000000e+00> : vector<64xf32>
    %9 = vector.multi_reduction <add>, %8, %cst_9 [0] : vector<88x64xf32> to vector<64xf32>
    %10 = vector.shape_cast %9 : vector<64xf32> to vector<1x64xf32>
    %11 = arith.mulf %8, %3 : vector<88x64xf32>
    %cst_10 = arith.constant dense<0.000000e+00> : vector<64xf32>
    %12 = vector.multi_reduction <add>, %11, %cst_10 [0] : vector<88x64xf32> to vector<64xf32>
    %13 = vector.shape_cast %12 : vector<64xf32> to vector<1x64xf32>
    %14 = tpu.concatenate %10, %13 in 0 : vector<1x64xf32>, vector<1x64xf32> -> vector<2x64xf32>
    %c0_11 = arith.constant 0 : index
    %c0_12 = arith.constant 0 : index
    %c0_13 = arith.constant 0 : index
    %c0_14 = arith.constant 0 : index
    %15 = vector.load %arg6[%c0_11, %c0_12, %c0_13, %c0_14] : memref<1x1x2x64xf32, #tpu.memory_space<vmem>>, vector<1x1x2x64xf32>
    %16 = vector.shape_cast %15 : vector<1x1x2x64xf32> to vector<2x64xf32>
    %17 = vector.shape_cast %14 : vector<2x64xf32> to vector<1x1x2x64xf32>
    tpu.vector_store %arg6[%c0_11, %c0_12, %c0_13, %c0_14], %17 {strides = array<i32>} : memref<1x1x2x64xf32, #tpu.memory_space<vmem>>, vector<1x1x2x64xf32>,
    return
  }
  func.func @transform_0(%arg0: i32, %arg1: i32) -> (i32, i32, i32) {
    %c0_i32 = arith.constant 0 : i32
    %c0_i32_0 = arith.constant 0 : i32
    return %arg0, %arg1, %c0_i32 : i32, i32, i32
  }
  func.func @transform_1(%arg0: i32, %arg1: i32) -> (i32, i32) {
    %c0_i32 = arith.constant 0 : i32
    %c0_i32_0 = arith.constant 0 : i32
    %c0_i32_1 = arith.constant 0 : i32
    return %c0_i32, %c0_i32_0 : i32, i32
  }
  func.func @transform_2(%arg0: i32, %arg1: i32) -> (i32, i32) {
    %c0_i32 = arith.constant 0 : i32
    %c0_i32_0 = arith.constant 0 : i32
    return %arg1, %c0_i32 : i32, i32
  }
  func.func @transform_3(%arg0: i32, %arg1: i32) -> (i32, i32, i32) {
    %c0_i32 = arith.constant 0 : i32
    %c0_i32_0 = arith.constant 0 : i32
    return %arg0, %arg1, %c0_i32 : i32, i32, i32
  }
  func.func @transform_4(%arg0: i32, %arg1: i32) -> (i32, i32, i32, i32) {
    %c0_i32 = arith.constant 0 : i32
    %c0_i32_0 = arith.constant 0 : i32
    %c0_i32_1 = arith.constant 0 : i32
    return %arg0, %arg1, %c0_i32, %c0_i32_0 : i32, i32, i32, i32
  }
}

module attributes {stable_mosaic.version = 11 : i64} {
  func.func @_bn_act_kernel(%arg0: i32, %arg1: i32, %arg2: memref<1x11x512xf32, #tpu.memory_space<vmem>>, %arg3: memref<1x512xf32, #tpu.memory_space<vmem>>, %arg4: memref<1x512xf32, #tpu.memory_space<vmem>>, %arg5: memref<1x11x512xf32, #tpu.memory_space<vmem>>) attributes {dimension_semantics = [#tpu.dimension_semantics<parallel>, #tpu.dimension_semantics<parallel>], iteration_bounds = array<i64: 2, 1>, scalar_prefetch = 0 : i64, scratch_operands = 0 : i64, tpu.core_type = #tpu.core_type<tc>, window_params = [{transform_indices = @transform_0, window_bounds = array<i64: 1, 11, 512>}, {pipeline_mode = #tpu.pipeline_mode<synchronous>, transform_indices = @transform_1, window_bounds = array<i64: 1, 512>}, {pipeline_mode = #tpu.pipeline_mode<synchronous>, transform_indices = @transform_2, window_bounds = array<i64: 1, 512>}, {transform_indices = @transform_3, window_bounds = array<i64: 1, 11, 512>}]} {
    %c0 = arith.constant 0 : index
    %c0_0 = arith.constant 0 : index
    %c0_1 = arith.constant 0 : index
    %0 = vector.load %arg2[%c0, %c0_0, %c0_1] : memref<1x11x512xf32, #tpu.memory_space<vmem>>, vector<1x11x512xf32>
    %1 = vector.shape_cast %0 : vector<1x11x512xf32> to vector<11x512xf32>
    %c0_2 = arith.constant 0 : index
    %c0_3 = arith.constant 0 : index
    %2 = vector.load %arg3[%c0_2, %c0_3] : memref<1x512xf32, #tpu.memory_space<vmem>>, vector<1x512xf32>
    %3 = vector.broadcast %2 : vector<1x512xf32> to vector<11x512xf32>
    %4 = arith.mulf %1, %3 : vector<11x512xf32>
    %c0_4 = arith.constant 0 : index
    %c0_5 = arith.constant 0 : index
    %5 = vector.load %arg4[%c0_4, %c0_5] : memref<1x512xf32, #tpu.memory_space<vmem>>, vector<1x512xf32>
    %6 = vector.broadcast %5 : vector<1x512xf32> to vector<11x512xf32>
    %7 = arith.addf %4, %6 : vector<11x512xf32>
    %cst = arith.constant 0.000000e+00 : f32
    %8 = vector.broadcast %cst : f32 to vector<11x512xf32>
    %9 = arith.cmpf oge, %7, %8 : vector<11x512xf32>
    %cst_6 = arith.constant 2.000000e-01 : f32
    %10 = vector.broadcast %cst_6 : f32 to vector<11x512xf32>
    %11 = arith.mulf %10, %7 : vector<11x512xf32>
    %12 = arith.select %9, %7, %11 : vector<11x512xi1>, vector<11x512xf32>
    %c0_7 = arith.constant 0 : index
    %c0_8 = arith.constant 0 : index
    %c0_9 = arith.constant 0 : index
    %13 = vector.load %arg5[%c0_7, %c0_8, %c0_9] : memref<1x11x512xf32, #tpu.memory_space<vmem>>, vector<1x11x512xf32>
    %14 = vector.shape_cast %13 : vector<1x11x512xf32> to vector<11x512xf32>
    %15 = vector.shape_cast %12 : vector<11x512xf32> to vector<1x11x512xf32>
    tpu.vector_store %arg5[%c0_7, %c0_8, %c0_9], %15 {strides = array<i32>} : memref<1x11x512xf32, #tpu.memory_space<vmem>>, vector<1x11x512xf32>,
    return
  }
  func.func @transform_0(%arg0: i32, %arg1: i32) -> (i32, i32, i32) {
    %c0_i32 = arith.constant 0 : i32
    %c0_i32_0 = arith.constant 0 : i32
    return %arg0, %arg1, %c0_i32 : i32, i32, i32
  }
  func.func @transform_1(%arg0: i32, %arg1: i32) -> (i32, i32) {
    %c0_i32 = arith.constant 0 : i32
    %c0_i32_0 = arith.constant 0 : i32
    %c0_i32_1 = arith.constant 0 : i32
    return %c0_i32, %c0_i32_0 : i32, i32
  }
  func.func @transform_2(%arg0: i32, %arg1: i32) -> (i32, i32) {
    %c0_i32 = arith.constant 0 : i32
    %c0_i32_0 = arith.constant 0 : i32
    %c0_i32_1 = arith.constant 0 : i32
    return %c0_i32, %c0_i32_0 : i32, i32
  }
  func.func @transform_3(%arg0: i32, %arg1: i32) -> (i32, i32, i32) {
    %c0_i32 = arith.constant 0 : i32
    %c0_i32_0 = arith.constant 0 : i32
    return %arg0, %arg1, %c0_i32 : i32, i32, i32
  }
}

</mosaic_0001>

<bundles_post_ra>
// kernel: tile.13
= control target key start
LH: loop header
LB: loop body
LE: loop exit
PB: predicated region body
PF: predicated region fallthrough
CT: control target
= control target key end

     0   :  { %s40_s0 = inlined_call_operand.vmem [shape: f32[16], index: 0, kind: input, shape index: {}]   ;;  %s41_s1 = inlined_call_operand.vmem [shape: f32[32,16], index: 1, kind: output, shape index: {}]  }
   0x1   :  { %v4_v0 = vld [vmem:[%s40_s0] ss:$0 sm:$0xff] }
   0x2   :  { %5 = vst [vmem:[%s41_s1] sm:$0xff] %v4_v0  ;;  %12 = vst [vmem:[%s41_s1 + $0x8] sm:$0xff] %v4_v0 }
   0x3   :  { %13 = vst [vmem:[%s41_s1 + $0x10] sm:$0xff] %v4_v0  ;;  %14 = vst [vmem:[%s41_s1 + $0x18] sm:$0xff] %v4_v0 }

// kernel: tile.14
= control target key start
LH: loop header
LB: loop body
LE: loop exit
PB: predicated region body
PF: predicated region fallthrough
CT: control target
= control target key end

     0   :  { %s89_s8 = smov 112   ;;  %s90_s11 = smov 80   ;;  %vm3_vm0 = vcmask 130048   ;;  %vm9_vm1 = vcmask 1048448   ;;  %vm15_vm2 = vcmask 917248   ;;  %vm21_vm3 = vcmask 786048   ;;  %s142_s0 = inlined_call_operand.vmem [shape: f32[32,16], index: 0, kind: input, shape index: {}]   ;;  %s143_s1 = inlined_call_operand.vmem [shape: f32[1,512], index: 1, kind: output, shape index: {}]  }
   0x1   :  { %v72_v0 = vld [vmem:[%s142_s0 + $0x7] ss:$8 sm:$0xf]   ;;  %v74_v1 = vld [vmem:[%s142_s0 + $0x5] ss:$8 sm:$0xf]  }
   0x2   :  { %7 = vrot.lane.b32.xlu0 %v72_v0, %s89_s8  ;;  %19 = vrot.lane.b32.xlu1 %v74_v1, %s90_s11  ;;  %v73_v2 = vld [vmem:[%s142_s0 + $0x6] ss:$8 sm:$0xf]   ;;  %v75_v3 = vld [vmem:[%s142_s0 + $0x4] ss:$8 sm:$0xf]  }
   0x3   :  { %s91_s16 = smov 96   ;;  %v2_v4 = vld [vmem:[%s142_s0] ss:$8 sm:$0xf]   ;;  %s92_s19 = smov 64   ;;  %vm27_vm4 = vcmask 654848  }
   0x4   :  { %v76_v5 = vld [vmem:[%s142_s0 + $0x3] ss:$8 sm:$0xf]   ;;  %4 = vst.msk [vmem:[#allocation0] ss:$8 sm:$0xf] %vm3_vm0, %v2_v4  }
   0x5   :  { %v77_v6 = vld [vmem:[%s142_s0 + $0x2] ss:$8 sm:$0xf]   ;;  %s93_s24 = smov 48   ;;  %s94_s25 = smov 32   ;;  %vm33_vm5 = vcmask 523648  }
   0x6   :  { %13 = vrot.lane.b32.xlu0 %v73_v2, %s91_s16  ;;  %25 = vrot.lane.b32.xlu1 %v75_v3, %s92_s19  ;;  %v78_v7 = vld [vmem:[%s142_s0 + $0x1] ss:$8 sm:$0xf]   ;;  %s95_s0 = smov 16   ;;  %vm39_vm6 = vcmask 392448   ;;  %vm45_vm7 = vcmask 261248  }
   0xa   :  { %31 = vrot.lane.b32.xlu0 %v76_v5, %s93_s24  ;;  %37 = vrot.lane.b32.xlu1 %v77_v6, %s94_s25 }
   0xe   :  { %43 = vrot.lane.b32.xlu0 %v78_v7, %s95_s0 }
  0x74   :  { %v8_v8 = vpop.permute.xlu0 %7   ;;  %v20_v9 = vpop.permute.xlu1 %19  }
  0x75   :  { %10 = vst.msk [vmem:[#allocation0] ss:$8 sm:$0xf] %vm9_vm1, %v8_v8  }
  0x78   :  { %v14_v10 = vpop.permute.xlu0 %13   ;;  %v26_v11 = vpop.permute.xlu1 %25  }
  0x79   :  { %16 = vst.msk [vmem:[#allocation0] ss:$8 sm:$0xf] %vm15_vm2, %v14_v10  }
  0x7a   :  { %22 = vst.msk [vmem:[#allocation0] ss:$8 sm:$0xf] %vm21_vm3, %v20_v9  }
  0x7b   :  { %28 = vst.msk [vmem:[#allocation0] ss:$8 sm:$0xf] %vm27_vm4, %v26_v11  }
  0x7c   :  { %v32_v12 = vpop.permute.xlu0 %31   ;;  %v38_v13 = vpop.permute.xlu1 %37  }
  0x7d   :  { %34 = vst.msk [vmem:[#allocation0] ss:$8 sm:$0xf] %vm33_vm5, %v32_v12  }
  0x7e   :  { %40 = vst.msk [vmem:[#allocation0] ss:$8 sm:$0xf] %vm39_vm6, %v38_v13  }
  0x80   :  { %v44_v14 = vpop.permute.xlu0 %43  }
  0x81   :  { %46 = vst.msk [vmem:[#allocation0] ss:$8 sm:$0xf] %vm45_vm7, %v44_v14  }
  0x88   :  { %v50_v15 = vld [vmem:[#allocation0] sm:$0x1]  ;;  %v54_v16 = vld [vmem:[#allocation0 + $0x8] sm:$0x1]  ;;  %v59_v17 = vld [vmem:[#allocation0 + $0x10] sm:$0x1] }
  0x89   :  { %52 = vst [vmem:[%s143_s1] sm:$0x1] %v50_v15  ;;  %79 = vst [vmem:[%s143_s1 + $0x1] sm:$0x1] %v54_v16  ;;  %v65_v18 = vld [vmem:[#allocation0 + $0x18] sm:$0x1] }
  0x8a   :  { %80 = vst [vmem:[%s143_s1 + $0x2] sm:$0x1] %v59_v17  ;;  %81 = vst [vmem:[%s143_s1 + $0x3] sm:$0x1] %v65_v18 }

// kernel: conv_transpose2d_block.2
= control target key start
LH: loop header
LB: loop body
LE: loop exit
PB: predicated region body
PF: predicated region fallthrough
CT: control target
= control target key end

     0   :  { %s861_s15 = smov 0   ;;  %s863_s16 = smov 0   ;;  %s1046_s0 = inlined_call_operand.vmem [shape: f32[2,88,32], index: 0, kind: input, shape index: {}]   ;;  %s1047_s1 = inlined_call_operand.vmem [shape: f32[32,64], index: 1, kind: input, shape index: {}]   ;;  %s1048_s2 = inlined_call_operand.vmem [shape: f32[88,64], index: 2, kind: input, shape index: {}]   ;;  %s1049_s3 = inlined_call_operand.vmem [shape: f32[2,88,64], index: 3, kind: output, shape index: {0}]   ;;  %s1050_s4 = inlined_call_operand.vmem [shape: f32[2,1,2,64], index: 4, kind: output, shape index: {1}]  }
   0x1   :  { %s865_s17 = smov 0  }
   0x2 LB: > { %s27_s18 = sadd.s32 1, %s827_s16  ;;  %p698_p0 = scmp.ge.s32.totalorder %s831_s17, 1  ;;  %s831_s17 = sphi %s865_s17, %s15_s17   ;;  %s827_s16 = sphi %s863_s16, %s1052_s16   ;;  %s823_s15 = sphi %s861_s15, %s1051_s15  }
   0x3   : > { %p29_p1 = scmp.ge.s32.totalorder %s27_s18, 2  ;;  %p199_p2 = scmp.lt.s32.totalorder %s831_s17, 3 }
   0x5   : > { %s1054_s18 = smov (%p29_p1, %s27_s18), 0  ;;  %p200_p3 = pnand %p698_p0, %p199_p2 }
   0x6   : > { %v289_v0 = vld [vmem:[%s1047_s1] sm:$0xff] (!%p200_p3)  ;;  %v290_v1 = vld [vmem:[%s1047_s1 + $0x8] sm:$0xff] (!%p200_p3)  ;;  %v291_v2 = vld [vmem:[%s1047_s1 + $0x10] sm:$0xff] (!%p200_p3)  ;;  %v833_v3 = vmov (!%p200_p3), 0.0|0.0   ;;  %vm834_vm0 = vmmov (!%p200_p3), 0   ;;  %v835_v6 = vmov (!%p200_p3), 0.0  }
   0x7   : > { %203 = sbr.rel (%p200_p3) target bundleno = 282 (0x11a), region = 32  ;;  %771 = vmatprep.subr.bf16.mxu0 (!%p200_p3), %v833_v3  ;;  %v772_v4 = vpack.c.bf16 (!%p200_p3), %v290_v1, %v289_v0  ;;  %v292_v5 = vld [vmem:[%s1047_s1 + $0x18] sm:$0xff] (!%p200_p3)  ;;  %738 = vmatprep.mubr.msk.f32.mxu0 (!%p200_p3), %vm834_vm0, %v835_v6  ;;  %p246_p4 = scmp.lt.s32.totalorder (!%p200_p3), %s823_s15, 1  ;;  %vm293_vm1 = vcmask (!%p200_p3), 261120   ;;  %vm447_vm2 = vcmask (!%p200_p3), 523264   ;;  %v459_v19 = vld [vmem:[%s1048_s2] sm:$0xff] (!%p200_p3) }
   0x8   : > { %777 = vmatprep.subr.bf16.mxu1 (!%p200_p3), %v833_v3  ;;  %756 = vmatprep.mubr.msk.f32.mxu1 (!%p200_p3), %vm834_vm0, %v835_v6  ;;  %v775_v7 = vpack.c.bf16 (!%p200_p3), %v292_v5, %v291_v2  ;;  %v460_v25 = vld [vmem:[%s1048_s2 + $0x8] sm:$0xff] (!%p200_p3)  ;;  %v461_v32 = vld [vmem:[%s1048_s2 + $0x10] sm:$0xff] (!%p200_p3)  ;;  %v462_v45 = vld [vmem:[%s1048_s2 + $0x18] sm:$0xff] (!%p200_p3)  ;;  %vm546_vm3 = vcmask (!%p200_p3), 1040384   ;;  %vm548_vm4 = vcmask (!%p200_p3), 517120  }
   0x9   : > { %773 = vmatpush3.bf16.msra.mxu0 (!%p200_p3), %v772_v4  ;;  %779 = vmatpush3.bf16.msra.mxu1 (!%p200_p3), %v772_v4  ;;  %v463_v56 = vld [vmem:[%s1048_s2 + $0x20] sm:$0xff] (!%p200_p3)  ;;  %v465_v60 = vld [vmem:[%s1048_s2 + $0x30] sm:$0xff] (!%p200_p3)  ;;  %v466_v4 = vld [vmem:[%s1048_s2 + $0x38] sm:$0xff] (!%p200_p3) }
   0xa   : > { %774 = vmatprep.subr.bf16.mxu0 (!%p200_p3), %v833_v3  ;;  %778 = vmatprep.subr.bf16.mxu1 (!%p200_p3), %v833_v3  ;;  %v464_v5 = vld [vmem:[%s1048_s2 + $0x28] sm:$0xff] (!%p200_p3) }
   0xd   : > { %776 = vmatpush3.bf16.msra.mxu0 (!%p200_p3), %v775_v7  ;;  %780 = vmatpush3.bf16.msra.mxu1 (!%p200_p3), %v775_v7 }
   0xe   : > { %s1056_s15 = smov (!%p246_p4, %s823_s15), 1 }
   0xf   : > { %s781_s27 = smul.u32 88, %s1056_s15 }
  0x11   : > { %s901_s30 = scalar_lea.vmem %s1046_s0, %s781_s27  ;;  %s939_s7 = scalar_lea.vmem %s1049_s3, %s781_s27 }
  0x12   : > { %v278_v8 = vld [vmem:[%s901_s30] sm:$0xff]  ;;  %v284_v9 = vld [vmem:[%s901_s30 + $0x30] sm:$0xff]  ;;  %v279_v10 = vld [vmem:[%s901_s30 + $0x8] sm:$0xff] }
  0x13   : > { %739 = vmatmul.mubr.msk.f32.vlgmr.msra.gmra.mrb[0].mxu0 %vm293_vm1, %v278_v8  ;;  %757 = vmatmul.mubr.msk.f32.vlgmr.msra.gmra.mrb[0].mxu1 %vm293_vm1, %v284_v9  ;;  %v285_v11 = vld [vmem:[%s901_s30 + $0x38] sm:$0xff]  ;;  %v280_v12 = vld [vmem:[%s901_s30 + $0x10] sm:$0xff]  ;;  %v286_v13 = vld [vmem:[%s901_s30 + $0x40] sm:$0xff] }
  0x14   : > { %741 = vmatprep.mubr.msk.f32.mxu0 %vm834_vm0, %v835_v6  ;;  %759 = vmatprep.mubr.msk.f32.mxu1 %vm834_vm0, %v835_v6  ;;  %v281_v14 = vld [vmem:[%s901_s30 + $0x18] sm:$0xff]  ;;  %v287_v15 = vld [vmem:[%s901_s30 + $0x48] sm:$0xff]  ;;  %v282_v16 = vld [vmem:[%s901_s30 + $0x20] sm:$0xff] }
  0x15   : > { %v288_v17 = vld [vmem:[%s901_s30 + $0x50] sm:$0xff]  ;;  %v283_v18 = vld [vmem:[%s901_s30 + $0x28] sm:$0xff] }
  0x17   : > { %742 = vmatmul.mubr.msk.f32.gmra.mrb[2].mxu0 %vm293_vm1, %v279_v10  ;;  %760 = vmatmul.mubr.msk.f32.gmra.mrb[2].mxu1 %vm293_vm1, %v285_v11  ;;  %v467_v11 = vld [vmem:[%s1048_s2 + $0x40] sm:$0xff] }
  0x18   : > { %744 = vmatprep.mubr.msk.f32.mxu0 %vm834_vm0, %v835_v6  ;;  %762 = vmatprep.mubr.msk.f32.mxu1 %vm834_vm0, %v835_v6 }
  0x1b   : > { %745 = vmatmul.mubr.msk.f32.gmra.mrb[4].mxu0 %vm293_vm1, %v280_v12  ;;  %763 = vmatmul.mubr.msk.f32.gmra.mrb[4].mxu1 %vm293_vm1, %v286_v13 }
  0x1c   : > { %747 = vmatprep.mubr.msk.f32.mxu0 %vm834_vm0, %v835_v6  ;;  %765 = vmatprep.mubr.msk.f32.mxu1 %vm834_vm0, %v835_v6 }
  0x1f   : > { %748 = vmatmul.mubr.msk.f32.gmra.mrb[6].mxu0 %vm293_vm1, %v281_v14  ;;  %766 = vmatmul.mubr.msk.f32.gmra.mrb[6].mxu1 %vm293_vm1, %v287_v15 }
  0x20   : > { %750 = vmatprep.mubr.msk.f32.mxu0 %vm834_vm0, %v835_v6  ;;  %768 = vmatprep.mubr.msk.f32.mxu1 %vm834_vm0, %v835_v6 }
  0x23   : > { %751 = vmatmul.mubr.msk.f32.gmra.mrb[8].mxu0 %vm293_vm1, %v282_v16  ;;  %769 = vmatmul.mubr.msk.f32.gmra.mrb[8].mxu1 %vm293_vm1, %v288_v17  ;;  %v468_v17 = vld [vmem:[%s1048_s2 + $0x48] sm:$0xff] }
  0x24   : > { %753 = vmatprep.mubr.msk.f32.mxu0 %vm834_vm0, %v835_v6 }
  0x27   : > { %754 = vmatmul.mubr.msk.f32.gmra.mrb[10].mxu0 %vm293_vm1, %v283_v18 }
  0xe6   : > { %v393_v20 = vpop.f32.mrb[0].mxu0  ;;  %v944_v21 = vpop.f32.mrb[0].mxu1 }
  0xe7   : > { %448 = vst.msk [vmem:[%s939_s7] sm:$0xff] %vm447_vm2, %v393_v20  ;;  %v470_v22 = vmul.f32 %v459_v19, %v393_v20  ;;  %v740_v23 = vpop.f32.mrb[1].mxu0  ;;  %454 = vst.msk [vmem:[%s939_s7 + $0x30] sm:$0xff] %vm447_vm2, %v944_v21  ;;  %v758_v24 = vpop.f32.mrb[1].mxu1  ;;  %v476_v6 = vmul.f32 %v465_v60, %v944_v21 }
  0xe8   : > { %v469_v24 = vld [vmem:[%s1048_s2 + $0x50] sm:$0xff] }
  0xe9   : > { %v508_v28 = vmul.f32 %v470_v22, %v393_v20  ;;  %v481_v33 = vsel %vm447_vm2, %v470_v22, 0.0  ;;  %v514_v18 = vmul.f32 %v476_v6, %v944_v21 }
  0xea   : > { %v398_v26 = vpop.f32.mrb[2].mxu0  ;;  %v954_v27 = vpop.f32.mrb[2].mxu1 }
  0xeb   : > { %449 = vst.msk [vmem:[%s939_s7 + $0x8] sm:$0xff] %vm447_vm2, %v398_v26  ;;  %v471_v29 = vmul.f32 %v460_v25, %v398_v26  ;;  %v743_v30 = vpop.f32.mrb[3].mxu0  ;;  %455 = vst.msk [vmem:[%s939_s7 + $0x38] sm:$0xff] %vm447_vm2, %v954_v27  ;;  %v761_v31 = vpop.f32.mrb[3].mxu1  ;;  %v519_v39 = vsel %vm447_vm2, %v508_v28, 0.0  ;;  %v477_v13 = vmul.f32 %v466_v4, %v954_v27  ;;  %v492_v25 = vsel %vm447_vm2, %v476_v6, 0.0 }
  0xec   : > { %v530_v21 = vsel %vm447_vm2, %v514_v18, 0.0 }
  0xed   : > { %v482_v34 = vsel %vm447_vm2, %v471_v29, 0.0  ;;  %v509_v35 = vmul.f32 %v471_v29, %v398_v26  ;;  %v515_v26 = vmul.f32 %v477_v13, %v954_v27 }
  0xee   : > { %v483_v36 = vadd.f32 %v482_v34, %v481_v33  ;;  %v403_v37 = vpop.f32.mrb[4].mxu0  ;;  %v966_v38 = vpop.f32.mrb[4].mxu1 }
  0xef   : > { %v520_v40 = vsel %vm447_vm2, %v509_v35, 0.0  ;;  %450 = vst.msk [vmem:[%s939_s7 + $0x10] sm:$0xff] %vm447_vm2, %v403_v37  ;;  %v472_v41 = vmul.f32 %v461_v32, %v403_v37  ;;  %v746_v42 = vpop.f32.mrb[5].mxu0  ;;  %456 = vst.msk [vmem:[%s939_s7 + $0x40] sm:$0xff] %vm447_vm2, %v966_v38  ;;  %v764_v43 = vpop.f32.mrb[5].mxu1  ;;  %v478_v22 = vmul.f32 %v467_v11, %v966_v38  ;;  %v494_v32 = vsel %vm447_vm2, %v477_v13, 0.0 }
  0xf0   : > { %v521_v44 = vadd.f32 %v520_v40, %v519_v39 }
  0xf1   : > { %v484_v46 = vsel %vm447_vm2, %v472_v41, 0.0  ;;  %v510_v47 = vmul.f32 %v472_v41, %v403_v37  ;;  %v516_v33 = vmul.f32 %v478_v22, %v966_v38  ;;  %v532_v37 = vsel %vm447_vm2, %v515_v26, 0.0 }
  0xf2   : > { %v485_v48 = vadd.f32 %v484_v46, %v483_v36  ;;  %v408_v49 = vpop.f32.mrb[6].mxu0  ;;  %v438_v50 = vpop.f32.mrb[6].mxu1  ;;  %v496_v39 = vsel %vm447_vm2, %v478_v22, 0.0 }
  0xf3   : > { %v522_v51 = vsel %vm447_vm2, %v510_v47, 0.0  ;;  %451 = vst.msk [vmem:[%s939_s7 + $0x18] sm:$0xff] %vm447_vm2, %v408_v49  ;;  %v473_v52 = vmul.f32 %v462_v45, %v408_v49  ;;  %v749_v53 = vpop.f32.mrb[7].mxu0  ;;  %457 = vst.msk [vmem:[%s939_s7 + $0x48] sm:$0xff] %vm447_vm2, %v438_v50  ;;  %v767_v54 = vpop.f32.mrb[7].mxu1  ;;  %v479_v29 = vmul.f32 %v468_v17, %v438_v50  ;;  %v534_v42 = vsel %vm447_vm2, %v516_v33, 0.0 }
  0xf4   : > { %v523_v55 = vadd.f32 %v522_v51, %v521_v44 }
  0xf5   : > { %v486_v57 = vsel %vm447_vm2, %v473_v52, 0.0  ;;  %v511_v58 = vmul.f32 %v473_v52, %v408_v49  ;;  %v517_v40 = vmul.f32 %v479_v29, %v438_v50  ;;  %v498_v43 = vsel %vm447_vm2, %v479_v29, 0.0 }
  0xf6   : > { %v487_v59 = vadd.f32 %v486_v57, %v485_v48  ;;  %v413_v61 = vpop.f32.mrb[8].mxu0  ;;  %v443_v62 = vpop.f32.mrb[8].mxu1 }
  0xf7   : > { %v524_v63 = vsel %vm447_vm2, %v511_v58, 0.0  ;;  %452 = vst.msk [vmem:[%s939_s7 + $0x20] sm:$0xff] %vm447_vm2, %v413_v61  ;;  %v474_v0 = vmul.f32 %v463_v56, %v413_v61  ;;  %v752_v1 = vpop.f32.mrb[9].mxu0  ;;  %458 = vst.msk [vmem:[%s939_s7 + $0x50] sm:$0xff] %vm447_vm2, %v443_v62  ;;  %v770_v2 = vpop.f32.mrb[9].mxu1  ;;  %v480_v34 = vmul.f32 %v469_v24, %v443_v62  ;;  %v536_v47 = vsel %vm447_vm2, %v517_v40, 0.0 }
  0xf8   : > { %v525_v3 = vadd.f32 %v524_v63, %v523_v55 }
  0xf9   : > { %v488_v7 = vsel %vm447_vm2, %v474_v0, 0.0  ;;  %v512_v8 = vmul.f32 %v474_v0, %v413_v61  ;;  %v500_v44 = vsel %vm447_vm2, %v480_v34, 0.0  ;;  %v518_v45 = vmul.f32 %v480_v34, %v443_v62 }
  0xfa   : > { %v489_v9 = vadd.f32 %v488_v7, %v487_v59  ;;  %v418_v10 = vpop.f32.mrb[10].mxu0 }
  0xfb   : > { %v526_v12 = vsel %vm447_vm2, %v512_v8, 0.0  ;;  %453 = vst.msk [vmem:[%s939_s7 + $0x28] sm:$0xff] %vm447_vm2, %v418_v10  ;;  %v475_v14 = vmul.f32 %v464_v5, %v418_v10  ;;  %v755_v15 = vpop.f32.mrb[11].mxu0  ;;  %v538_v51 = vsel %vm447_vm2, %v518_v45, 0.0  ;;  %s701_s7 = sshll.u32 %s1056_s15, 1 }
  0xfc   : > { %v527_v16 = vadd.f32 %v526_v12, %v525_v3  ;;  %s277_s11 = scalar_lea.vmem %s1050_s4, %s701_s7 }
  0xfd   : > { %v490_v19 = vsel %vm447_vm2, %v475_v14, 0.0  ;;  %v513_v20 = vmul.f32 %v475_v14, %v418_v10 }
  0xfe   : > { %v491_v23 = vadd.f32 %v490_v19, %v489_v9 }
  0xff   : > { %v528_v28 = vsel %vm447_vm2, %v513_v20, 0.0 }
 0x100   : > { %v493_v30 = vadd.f32 %v492_v25, %v491_v23  ;;  %v529_v31 = vadd.f32 %v528_v28, %v527_v16 }
 0x102   : > { %v531_v35 = vadd.f32 %v530_v21, %v529_v31  ;;  %v495_v36 = vadd.f32 %v494_v32, %v493_v30 }
 0x104   : > { %v497_v27 = vadd.f32 %v496_v39, %v495_v36  ;;  %v533_v41 = vadd.f32 %v532_v37, %v531_v35 }
 0x106   : > { %v535_v46 = vadd.f32 %v534_v42, %v533_v41  ;;  %v499_v38 = vadd.f32 %v498_v43, %v497_v27 }
 0x108   : > { %v537_v48 = vadd.f32 %v536_v47, %v535_v46  ;;  %v501_v49 = vadd.f32 %v500_v44, %v499_v38 }
 0x10a   : > { %v502_v52 = vrot.slane %v501_v49, 4  ;;  %v539_v50 = vadd.f32 %v538_v51, %v537_v48 }
 0x10c   : > { %v503_v53 = vadd.f32 %v502_v52, %v501_v49  ;;  %v540_v54 = vrot.slane %v539_v50, 4 }
 0x10e   : > { %v504_v55 = vrot.slane %v503_v53, 2  ;;  %v541_v56 = vadd.f32 %v540_v54, %v539_v50 }
 0x110   : > { %v505_v57 = vadd.f32 %v504_v55, %v503_v53  ;;  %v542_v58 = vrot.slane %v541_v56, 2 }
 0x112   : > { %v506_v59 = vrot.slane %v505_v57, 1  ;;  %v543_v60 = vadd.f32 %v542_v58, %v541_v56 }
 0x114   : > { %v544_v61 = vrot.slane %v543_v60, 1  ;;  %v507_v62 = vadd.f32 %v506_v59, %v505_v57 }
 0x116   : > { %v545_v63 = vadd.f32 %v544_v61, %v543_v60 }
 0x118   : > { %v547_v0 = vsel %vm546_vm3, %v507_v62, %v545_v63 }
 0x119   : > { %549 = vst.msk [vmem:[%s277_s11] sm:$0x3] %vm548_vm4, %v547_v0 }
 0x11a PF: > { %s15_s17 = sadd.s32 1, %s831_s17   ;;  %s1051_s15 = smov %s827_s16 }
 0x11b   : > { %p12_p5 = scmp.ge.s32.totalorder %s15_s17, 4   ;;  %s1052_s16 = smov %s1054_s18 }
 0x11d   :  { %14 = sbr.rel (!%p12_p5) target bundleno = 2 (0x2), region = 77 }

// kernel: conv_transpose2d_block.3
= control target key start
LH: loop header
LB: loop body
LE: loop exit
PB: predicated region body
PF: predicated region fallthrough
CT: control target
= control target key end

     0   :  { %s492_s12 = smov 0   ;;  %s494_s13 = smov 0   ;;  %s548_s0 = inlined_call_operand.vmem [shape: f32[2,11,512], index: 0, kind: input, shape index: {}]   ;;  %s549_s1 = inlined_call_operand.vmem [shape: f32[1,512], index: 1, kind: input, shape index: {}]   ;;  %s550_s2 = inlined_call_operand.vmem [shape: f32[1,512], index: 2, kind: input, shape index: {}]   ;;  %s551_s3 = inlined_call_operand.vmem [shape: f32[2,11,512], index: 3, kind: output, shape index: {}]  }
   0x1   :  { %s496_s14 = smov 0  }
   0x2 LB: > { %s25_s15 = sadd.s32 1, %s466_s13  ;;  %p415_p0 = scmp.ge.s32.totalorder %s470_s14, 1  ;;  %s470_s14 = sphi %s496_s14, %s13_s14   ;;  %s466_s13 = sphi %s494_s13, %s553_s13   ;;  %s462_s12 = sphi %s492_s12, %s552_s12  }
   0x3   : > { %p27_p1 = scmp.ge.s32.totalorder %s25_s15, 2  ;;  %p159_p2 = scmp.lt.s32.totalorder %s470_s14, 3 }
   0x5   : > { %s555_s15 = smov (%p27_p1, %s25_s15), 0  ;;  %p160_p3 = pnand %p415_p0, %p159_p2 }
   0x6   : > { %p194_p4 = scmp.lt.s32.totalorder (!%p160_p3), %s462_s12, 1  ;;  %v225_v0 = vlaneseq (!%p160_p3)  ;;  %v223_v2 = vld [vmem:[%s549_s1] sm:$0xf] (!%p160_p3) }
   0x7   : > { %163 = sbr.rel (%p160_p3) target bundleno = 31 (0x1f), region = 32  ;;  %v253_v3 = vld [vmem:[%s550_s2] sm:$0xf] (!%p160_p3) }
   0x8   : > { %v226_v1 = vshrl.u32 (!%p160_p3), %v225_v0, 7 }
   0xa   : > { %v227_v4 = vsub.s32 (!%p160_p3), 0, %v226_v1  ;;  %v231_v5 = vsub.s32 (!%p160_p3), 1, %v226_v1  ;;  %v235_v6 = vsub.s32 (!%p160_p3), 2, %v226_v1  ;;  %v239_v7 = vsub.s32 (!%p160_p3), 3, %v226_v1 }
   0xc   : > { %v228_v9 = vrot.slane (!%p160_p3), %v223_v2, %v227_v4  ;;  %v258_v10 = vrot.slane (!%p160_p3), %v253_v3, %v227_v4  ;;  %v232_v12 = vrot.slane (!%p160_p3), %v223_v2, %v231_v5  ;;  %v262_v13 = vrot.slane (!%p160_p3), %v253_v3, %v231_v5 }
   0xd   : > { %v236_v15 = vrot.slane (!%p160_p3), %v223_v2, %v235_v6  ;;  %v266_v16 = vrot.slane (!%p160_p3), %v253_v3, %v235_v6  ;;  %v240_v18 = vrot.slane (!%p160_p3), %v223_v2, %v239_v7  ;;  %v270_v19 = vrot.slane (!%p160_p3), %v253_v3, %v239_v7 }
   0xe   : > { %s557_s12 = smov (!%p194_p4, %s462_s12), 1 }
   0xf   : > { %s422_s20 = sshll.u32 %s557_s12, 6 }
  0x10   : > { %s202_s23 = scalar_lea.vmem %s548_s0, %s422_s20  ;;  %s529_s26 = scalar_lea.vmem %s551_s3, %s422_s20 }
  0x11   : > { %v215_v8 = vld [vmem:[%s202_s23] sm:$0xff]  ;;  %v216_v11 = vld [vmem:[%s202_s23 + $0x8] sm:$0xff]  ;;  %v217_v14 = vld [vmem:[%s202_s23 + $0x10] sm:$0xff] }
  0x12   : > { %v218_v17 = vld [vmem:[%s202_s23 + $0x18] sm:$0xff]  ;;  %v219_v20 = vld [vmem:[%s202_s23 + $0x20] sm:$0x7]  ;;  %v220_v21 = vld [vmem:[%s202_s23 + $0x28] sm:$0x7]  ;;  %v245_v22 = vmul.f32 %v228_v9, %v215_v8  ;;  %v246_v23 = vmul.f32 %v232_v12, %v216_v11  ;;  %v247_v28 = vmul.f32 %v236_v15, %v217_v14 }
  0x13   : > { %v249_v24 = vmul.f32 %v228_v9, %v219_v20  ;;  %v250_v25 = vmul.f32 %v232_v12, %v220_v21  ;;  %v221_v26 = vld [vmem:[%s202_s23 + $0x30] sm:$0x7]  ;;  %v222_v27 = vld [vmem:[%s202_s23 + $0x38] sm:$0x7]  ;;  %v248_v29 = vmul.f32 %v240_v18, %v218_v17 }
  0x14   : > { %v251_v30 = vmul.f32 %v236_v15, %v221_v26  ;;  %v252_v31 = vmul.f32 %v240_v18, %v222_v27  ;;  %v275_v32 = vadd.f32 %v258_v10, %v245_v22  ;;  %v276_v33 = vadd.f32 %v262_v13, %v246_v23 }
  0x15   : > { %v279_v34 = vadd.f32 %v258_v10, %v249_v24  ;;  %v280_v35 = vadd.f32 %v262_v13, %v250_v25  ;;  %v277_v36 = vadd.f32 %v266_v16, %v247_v28  ;;  %v278_v37 = vadd.f32 %v270_v19, %v248_v29 }
  0x16   : > { %v281_v38 = vadd.f32 %v266_v16, %v251_v30  ;;  %v282_v39 = vadd.f32 %v270_v19, %v252_v31  ;;  %vm283_vm0 = vcmp.ge.f32.partialorder %v275_v32, 0.0  ;;  %v291_v40 = vmul.f32 0.2, %v275_v32 }
  0x17   : > { %vm284_vm1 = vcmp.ge.f32.partialorder %v276_v33, 0.0  ;;  %v292_v41 = vmul.f32 0.2, %v276_v33  ;;  %vm285_vm2 = vcmp.ge.f32.partialorder %v277_v36, 0.0  ;;  %v293_v42 = vmul.f32 0.2, %v277_v36 }
  0x18   : > { %vm286_vm3 = vcmp.ge.f32.partialorder %v278_v37, 0.0  ;;  %v294_v43 = vmul.f32 0.2, %v278_v37  ;;  %v299_v44 = vsel %vm283_vm0, %v275_v32, %v291_v40  ;;  %vm287_vm4 = vcmp.ge.f32.partialorder %v279_v34, 0.0 }
  0x19   : > { %v300_v45 = vsel %vm284_vm1, %v276_v33, %v292_v41  ;;  %v295_v46 = vmul.f32 0.2, %v279_v34  ;;  %307 = vst [vmem:[%s529_s26] sm:$0xff] %v299_v44  ;;  %v301_v47 = vsel %vm285_vm2, %v277_v36, %v293_v42  ;;  %vm288_vm5 = vcmp.ge.f32.partialorder %v280_v35, 0.0 }
  0x1a   : > { %308 = vst [vmem:[%s529_s26 + $0x8] sm:$0xff] %v300_v45  ;;  %v302_v48 = vsel %vm286_vm3, %v278_v37, %v294_v43  ;;  %v296_v49 = vmul.f32 0.2, %v280_v35  ;;  %309 = vst [vmem:[%s529_s26 + $0x10] sm:$0xff] %v301_v47  ;;  %vm289_vm6 = vcmp.ge.f32.partialorder %v281_v38, 0.0  ;;  %vm290_vm7 = vcmp.ge.f32.partialorder %v282_v39, 0.0 }
  0x1b   : > { %310 = vst [vmem:[%s529_s26 + $0x18] sm:$0xff] %v302_v48  ;;  %v303_v50 = vsel %vm287_vm4, %v279_v34, %v295_v46  ;;  %v297_v51 = vmul.f32 0.2, %v281_v38  ;;  %v298_v53 = vmul.f32 0.2, %v282_v39 }
  0x1c   : > { %311 = vst [vmem:[%s529_s26 + $0x20] sm:$0x7] %v303_v50  ;;  %v304_v52 = vsel %vm288_vm5, %v280_v35, %v296_v49 }
  0x1d   : > { %312 = vst [vmem:[%s529_s26 + $0x28] sm:$0x7] %v304_v52  ;;  %v305_v54 = vsel %vm289_vm6, %v281_v38, %v297_v51  ;;  %v306_v55 = vsel %vm290_vm7, %v282_v39, %v298_v53 }
  0x1e   : > { %313 = vst [vmem:[%s529_s26 + $0x30] sm:$0x7] %v305_v54  ;;  %314 = vst [vmem:[%s529_s26 + $0x38] sm:$0x7] %v306_v55 }
  0x1f PF: > { %s13_s14 = sadd.s32 1, %s470_s14   ;;  %s552_s12 = smov %s466_s13 }
  0x20   : > { %p10_p5 = scmp.ge.s32.totalorder %s13_s14, 4   ;;  %s553_s13 = smov %s555_s15 }
  0x22   :  { %12 = sbr.rel (!%p10_p5) target bundleno = 2 (0x2), region = 62 }

</bundles_post_ra>
